<compile_context>
chip_gen: v6e
topology: v6e:2x2x1
jax: 0.10.0
libtpu: 0.0.40
codegen_flags: <defaults>
</compile_context>

<pallas_src>
import functools

import jax
import jax.numpy as jnp
from jax import lax
from jax.experimental import pallas as pl
from jax.experimental.pallas import tpu as pltpu


def _label_smoothing_kernel(pred_ref, tgt_ref, w_ref, wloss_ref, wsum_ref, *,
                            classes: int, smoothing: float):
    confidence = 1.0 - smoothing
    smooth_val = smoothing / (classes - 1)

    pred = pred_ref[...].astype(jnp.float32)    # (T, C) cast per-tile in VMEM
    tgt = tgt_ref[...]                          # (T, 1) int32
    w = w_ref[...].astype(jnp.float32)          # (1, C)

    t, c = pred.shape

    # log_softmax pieces along the class (lane) dimension; logp never materialized.
    m = jnp.max(pred, axis=-1, keepdims=True)
    shifted = pred - m
    lse = jnp.log(jnp.sum(jnp.exp(shifted), axis=-1, keepdims=True))

    # sum_j logp_ij = sum_j shifted_ij - C * lse_i
    row_sum_logp = jnp.sum(shifted, axis=-1, keepdims=True) - c * lse      # (T, 1)

    # one-hot of the target class: used for logp at target and per-sample weight
    col = lax.broadcasted_iota(jnp.int32, (t, c), 1)
    onehot = (col == tgt).astype(jnp.float32)                              # (T, C)
    logp_at_tgt = jnp.sum(onehot * shifted, axis=-1, keepdims=True) - lse  # (T, 1)
    per_sample_w = jnp.sum(onehot * w, axis=-1, keepdims=True)             # (T, 1)

    per_sample_loss = -(smooth_val * row_sum_logp
                        + (confidence - smooth_val) * logp_at_tgt)         # (T, 1)

    wloss_ref[...] = per_sample_loss * per_sample_w
    wsum_ref[...] = per_sample_w


def _choose_tile_n(n: int, c: int, itemsize: int) -> int:
    """~1 MiB pred tile per buffer; multiple of 16 sublanes (covers f32 & bf16)."""
    target_bytes = 1 << 20
    t = max(1, target_bytes // max(1, c * itemsize))
    t = max(16, (t // 16) * 16)
    if t >= n:
        return n                      # single block == full array (always legal)
    return t


def label_smoothing_loss(pred, target, weight=None, *, smoothing=0.2, tile_n=None):
    """pred: (N, C) float (f32/bf16); target: (N,) int; weight: optional (C,) float.

    Note: caller must guarantee sum(weight[target]) != 0 (same precondition as
    the PyTorch reference).
    """
    n, c = pred.shape
    if weight is None:
        weight = jnp.ones((c,), dtype=jnp.float32)

    tgt2d = target.astype(jnp.int32).reshape(n, 1)
    w2d = weight.astype(jnp.float32).reshape(1, c)

    if tile_n is None:
        tile_n = _choose_tile_n(n, c, jnp.dtype(pred.dtype).itemsize)
    tile_n = min(tile_n, n)
    grid = (pl.cdiv(n, tile_n),)

    kernel = functools.partial(_label_smoothing_kernel,
                               classes=c, smoothing=float(smoothing))

    wloss, wsum = pl.pallas_call(
        kernel,
        out_shape=(jax.ShapeDtypeStruct((n, 1), jnp.float32),
                   jax.ShapeDtypeStruct((n, 1), jnp.float32)),
        grid=grid,
        in_specs=[
            pl.BlockSpec((tile_n, c), lambda i: (i, 0)),   # pred tile (native dtype)
            pl.BlockSpec((tile_n, 1), lambda i: (i, 0)),   # target tile
            pl.BlockSpec((1, c), lambda i: (0, 0)),        # class weights, resident
        ],
        out_specs=(
            pl.BlockSpec((tile_n, 1), lambda i: (i, 0)),   # per-row weighted loss
            pl.BlockSpec((tile_n, 1), lambda i: (i, 0)),   # per-row weight
        ),
        compiler_params=pltpu.CompilerParams(
            dimension_semantics=("parallel",)),            # row tiles independent
    )(pred, tgt2d, w2d)

    # mean(weighted) * N / sum(w) == sum(weighted) / sum(w)
    return jnp.sum(wloss) / jnp.sum(wsum)


def _reference_loss(pred, target, weight, smoothing):
    # pure-JAX reference mirroring the PyTorch module
    confidence = 1.0 - smoothing
    c = pred.shape[-1]
    logp = jax.nn.log_softmax(pred.astype(jnp.float32), axis=-1)
    true_dist = jnp.full_like(logp, smoothing / (c - 1))
    true_dist = true_dist.at[jnp.arange(pred.shape[0]), target].set(confidence)
    w = weight.astype(jnp.float32)[target]
    weighted = jnp.sum(-true_dist * logp, axis=-1) * w
    return jnp.mean(weighted) * w.size / jnp.sum(w)


if __name__ == "__main__":
    key = jax.random.PRNGKey(0)
    k1, k2, k3 = jax.random.split(key, 3)

    N, C = 20, 128          # small batch, lane-aligned class count
    smoothing = 0.2

    pred = jax.random.normal(k1, (N, C), dtype=jnp.float32)
    target = jax.random.randint(k2, (N,), 0, C, dtype=jnp.int32)
    weight = jax.random.uniform(k3, (C,), dtype=jnp.float32, minval=0.5, maxval=1.5)

    # 1) f32, multi-block grid (tile_n=8 -> 3 row tiles, last one partial)
    loss = label_smoothing_loss(pred, target, weight, smoothing=smoothing, tile_n=8)
    jax.block_until_ready(loss)
    ref = _reference_loss(pred, target, weight, smoothing)
    assert jnp.allclose(loss, ref, rtol=1e-5, atol=1e-5), (loss, ref)

    # 2) auto tile (single block), default (ones) class weights
    loss2 = label_smoothing_loss(pred, target, None, smoothing=smoothing)
    jax.block_until_ready(loss2)
    ref2 = _reference_loss(pred, target, jnp.ones((C,), jnp.float32), smoothing)
    assert jnp.allclose(loss2, ref2, rtol=1e-5, atol=1e-5), (loss2, ref2)

    # 3) bf16 pred stays bf16 in HBM; cast to f32 happens per-tile inside the kernel
    pred_bf16 = pred.astype(jnp.bfloat16)
    loss3 = label_smoothing_loss(pred_bf16, target, weight,
                                 smoothing=smoothing, tile_n=16)
    jax.block_until_ready(loss3)
    ref3 = _reference_loss(pred_bf16, target, weight, smoothing)
    assert jnp.allclose(loss3, ref3, rtol=1e-4, atol=1e-4), (loss3, ref3)

    print("KERNEL_OK")
</pallas_src>

<mosaic_0001>
module attributes {stable_mosaic.version = 11 : i64} {
  func.func @_label_smoothing_kernel(%arg0: i32, %arg1: memref<8x128xf32, #tpu.memory_space<vmem>>, %arg2: memref<8x1xi32, #tpu.memory_space<vmem>>, %arg3: memref<1x128xf32, #tpu.memory_space<vmem>>, %arg4: memref<8x1xf32, #tpu.memory_space<vmem>>, %arg5: memref<8x1xf32, #tpu.memory_space<vmem>>) attributes {dimension_semantics = [#tpu.dimension_semantics<parallel>], iteration_bounds = array<i64: 3>, scalar_prefetch = 0 : i64, scratch_operands = 0 : i64, tpu.core_type = #tpu.core_type<tc>, window_params = [{transform_indices = @transform_0, window_bounds = array<i64: 8, 128>}, {transform_indices = @transform_1, window_bounds = array<i64: 8, 1>}, {pipeline_mode = #tpu.pipeline_mode<synchronous>, transform_indices = @transform_2, window_bounds = array<i64: 1, 128>}, {transform_indices = @transform_3, window_bounds = array<i64: 8, 1>}, {transform_indices = @transform_4, window_bounds = array<i64: 8, 1>}]} {
    %c0 = arith.constant 0 : index
    %c0_0 = arith.constant 0 : index
    %0 = vector.load %arg1[%c0, %c0_0] : memref<8x128xf32, #tpu.memory_space<vmem>>, vector<8x128xf32>
    %c0_1 = arith.constant 0 : index
    %c0_2 = arith.constant 0 : index
    %1 = vector.load %arg2[%c0_1, %c0_2] : memref<8x1xi32, #tpu.memory_space<vmem>>, vector<8x1xi32>
    %c0_3 = arith.constant 0 : index
    %c0_4 = arith.constant 0 : index
    %2 = vector.load %arg3[%c0_3, %c0_4] : memref<1x128xf32, #tpu.memory_space<vmem>>, vector<1x128xf32>
    %cst = arith.constant dense<0xFF800000> : vector<8xf32>
    %3 = vector.multi_reduction <maximumf>, %0, %cst [1] : vector<8x128xf32> to vector<8xf32>
    %4 = vector.shape_cast %3 : vector<8xf32> to vector<8x1xf32>
    %5 = vector.broadcast %4 : vector<8x1xf32> to vector<8x128xf32>
    %6 = arith.subf %0, %5 : vector<8x128xf32>
    %7 = math.exp %6 : vector<8x128xf32>
    %cst_5 = arith.constant dense<0.000000e+00> : vector<8xf32>
    %8 = vector.multi_reduction <add>, %7, %cst_5 [1] : vector<8x128xf32> to vector<8xf32>
    %9 = vector.shape_cast %8 : vector<8xf32> to vector<8x1xf32>
    %10 = math.log %9 : vector<8x1xf32>
    %cst_6 = arith.constant dense<0.000000e+00> : vector<8xf32>
    %11 = vector.multi_reduction <add>, %6, %cst_6 [1] : vector<8x128xf32> to vector<8xf32>
    %12 = vector.shape_cast %11 : vector<8xf32> to vector<8x1xf32>
    %cst_7 = arith.constant 1.280000e+02 : f32
    %13 = vector.broadcast %cst_7 : f32 to vector<8x1xf32>
    %14 = arith.mulf %13, %10 : vector<8x1xf32>
    %15 = arith.subf %12, %14 : vector<8x1xf32>
    %16 = tpu.iota {dimensions = array<i32: 1>} : vector<8x128xi32>
    %17 = vector.broadcast %1 : vector<8x1xi32> to vector<8x128xi32>
    %18 = arith.cmpi eq, %16, %17 : vector<8x128xi32>
    %19 = arith.extui %18 : vector<8x128xi1> to vector<8x128xi32>
    %20 = arith.sitofp %19 : vector<8x128xi32> to vector<8x128xf32>
    %21 = arith.mulf %20, %6 : vector<8x128xf32>
    %cst_8 = arith.constant dense<0.000000e+00> : vector<8xf32>
    %22 = vector.multi_reduction <add>, %21, %cst_8 [1] : vector<8x128xf32> to vector<8xf32>
    %23 = vector.shape_cast %22 : vector<8xf32> to vector<8x1xf32>
    %24 = arith.subf %23, %10 : vector<8x1xf32>
    %25 = vector.broadcast %2 : vector<1x128xf32> to vector<8x128xf32>
    %26 = arith.mulf %20, %25 : vector<8x128xf32>
    %cst_9 = arith.constant dense<0.000000e+00> : vector<8xf32>
    %27 = vector.multi_reduction <add>, %26, %cst_9 [1] : vector<8x128xf32> to vector<8xf32>
    %28 = vector.shape_cast %27 : vector<8xf32> to vector<8x1xf32>
    %cst_10 = arith.constant 0.00157480314 : f32
    %29 = vector.broadcast %cst_10 : f32 to vector<8x1xf32>
    %30 = arith.mulf %29, %15 : vector<8x1xf32>
    %cst_11 = arith.constant 0.798425197 : f32
    %31 = vector.broadcast %cst_11 : f32 to vector<8x1xf32>
    %32 = arith.mulf %31, %24 : vector<8x1xf32>
    %33 = arith.addf %30, %32 : vector<8x1xf32>
    %cst_12 = arith.constant 0.000000e+00 : f32
    %34 = vector.broadcast %cst_12 : f32 to vector<8x1xf32>
    %35 = arith.subf %34, %33 : vector<8x1xf32>
    %36 = arith.mulf %35, %28 : vector<8x1xf32>
    %c0_13 = arith.constant 0 : index
    %c0_14 = arith.constant 0 : index
    %37 = vector.load %arg4[%c0_13, %c0_14] : memref<8x1xf32, #tpu.memory_space<vmem>>, vector<8x1xf32>
    tpu.vector_store %arg4[%c0_13, %c0_14], %36 {strides = array<i32>} : memref<8x1xf32, #tpu.memory_space<vmem>>, vector<8x1xf32>,
    %c0_15 = arith.constant 0 : index
    %c0_16 = arith.constant 0 : index
    %38 = vector.load %arg5[%c0_15, %c0_16] : memref<8x1xf32, #tpu.memory_space<vmem>>, vector<8x1xf32>
    tpu.vector_store %arg5[%c0_15, %c0_16], %28 {strides = array<i32>} : memref<8x1xf32, #tpu.memory_space<vmem>>, vector<8x1xf32>,
    return
  }
  func.func @transform_0(%arg0: i32) -> (i32, i32) {
    %c0_i32 = arith.constant 0 : i32
    %c0_i32_0 = arith.constant 0 : i32
    return %arg0, %c0_i32 : i32, i32
  }
  func.func @transform_1(%arg0: i32) -> (i32, i32) {
    %c0_i32 = arith.constant 0 : i32
    %c0_i32_0 = arith.constant 0 : i32
    return %arg0, %c0_i32 : i32, i32
  }
  func.func @transform_2(%arg0: i32) -> (i32, i32) {
    %c0_i32 = arith.constant 0 : i32
    %c0_i32_0 = arith.constant 0 : i32
    %c0_i32_1 = arith.constant 0 : i32
    return %c0_i32, %c0_i32_0 : i32, i32
  }
  func.func @transform_3(%arg0: i32) -> (i32, i32) {
    %c0_i32 = arith.constant 0 : i32
    %c0_i32_0 = arith.constant 0 : i32
    return %arg0, %c0_i32 : i32, i32
  }
  func.func @transform_4(%arg0: i32) -> (i32, i32) {
    %c0_i32 = arith.constant 0 : i32
    %c0_i32_0 = arith.constant 0 : i32
    return %arg0, %c0_i32 : i32, i32
  }
}

</mosaic_0001>

<bundles_post_ra>
// kernel: tpu_custom_call.1
= control target key start
LH: loop header
LB: loop body
LE: loop exit
PB: predicated region body
PF: predicated region fallthrough
CT: control target
= control target key end

     0   :  { %s425_s15 = smov 0   ;;  %s457_s0 = inlined_call_operand.vmem [shape: f32[20,128], index: 0, kind: input, shape index: {}]   ;;  %s458_s1 = inlined_call_operand.vmem [shape: s32[20,1], index: 1, kind: input, shape index: {}]   ;;  %s459_s2 = inlined_call_operand.vmem [shape: f32[1,128], index: 2, kind: input, shape index: {}]   ;;  %s460_s3 = inlined_call_operand.vmem [shape: f32[20,1], index: 3, kind: output, shape index: {0}]   ;;  %s461_s4 = inlined_call_operand.vmem [shape: f32[20,1], index: 4, kind: output, shape index: {1}]  }
   0x1 LB: > { %s362_s16 = sadd.s32 4294967295, %s396_s15   ;;  %p366_p0 = scmp.ge.s32.totalorder %s396_s15, 1  ;;  %s396_s15 = sphi %s425_s15, %s15_s15  }
   0x2   : > { %p173_p1 = scmp.lt.s32.totalorder %s396_s15, 4 }
   0x4   : > { %p174_p2 = pnand %p366_p0, %p173_p1 }
   0x5   : > { %p205_p3 = scmp.lt.s32.totalorder (!%p174_p2), %s362_s16, 2 }
   0x6   : > { %177 = sbr.rel (%p174_p2) target bundleno = 338 (0x152), region = 32 }
   0xb   : > { %v398_v0 = vmov 0   ;;  %s463_s16 = smov (!%p205_p3, %s362_s16), 2  ;;  %v237_v6 = vlaneseq  ;;  %v399_v10 = vmov 0.0   ;;  %v372_v12 = vld [vmem:[%s459_s2] ss:$0 sm:$0xff]  ;;  %vm263_vm1 = vcmask 7168  }
   0xc   : > { %385 = vset.pattern.permute.xlu0 %v398_v0  ;;  %s433_s17 = sshll.u32 %s463_s16, 3 }
   0xd   : > { %s208_s20 = scalar_lea.vmem %s457_s0, %s433_s17  ;;  %s212_s23 = scalar_lea.vmem %s458_s1, %s433_s17  ;;  %v238_v7 = vand.u32 127, %v237_v6 }
   0xe   : > { %v221_v1 = vld [vmem:[%s208_s20] sm:$0xff]  ;;  %s220_s28 = scalar_lea.vmem %s461_s4, %s433_s17  ;;  %s216_s5 = scalar_lea.vmem %s460_s3, %s433_s17 }
   0xf   : > { %224 = vmax.xlane.f32.xlu0 %v221_v1  ;;  %v222_v2 = vld [vmem:[%s212_s23] sm:$0xff] }
  0x25   : > { %240 = vperm.xlu0 %385, %v222_v2  }
  0x98   : > { %v225_v3 = vpop.xlane.xlu0 %224 }
  0x99   : > { %v226_v4 = vsub.f32 %v221_v1, %v225_v3 }
  0x9b   : > { %v227_v5 = vmul.f32 1.442695, %v226_v4 }
  0x9d   : > { %386 = vpow2.f32 %v227_v5 }
  0xa0   : > { %v241_v8 = vpop.permute.xlu0 %240 }
  0xa1   : > { %vm242_vm0 = vcmp.eq.s32.totalorder %v238_v7, %v241_v8 }
  0xa2   : > { %v371_v11 = vsel %vm242_vm0, 1.0, %v399_v10 }
  0xa3   : > { %v245_v13 = vmul.f32 %v371_v11, %v226_v4  ;;  %v255_v14 = vmul.f32 %v372_v12, %v371_v11 }
  0xaa   : > { %v387_v9 = vpop.eup %386 }
  0xab   : > { %229 = vadd.xlane.f32.xlu1 %v387_v9 }
  0xaf   : > { %233 = vadd.xlane.f32.xlu1 %v226_v4 }
  0xb3   : > { %246 = vadd.xlane.f32.xlu1 %v245_v13 }
  0xb7   : > { %256 = vadd.xlane.f32.xlu1 %v255_v14 }
 0x134   : > { %v230_v15 = vpop.xlane.xlu1 %229 }
 0x135   : > { %388 = vlog2.f32 %v230_v15 }
 0x138   : > { %v234_v16 = vpop.xlane.xlu1 %233 }
 0x13c   : > { %v247_v17 = vpop.xlane.xlu1 %246 }
 0x140   : > { %v257_v18 = vpop.xlane.xlu1 %256 }
 0x141   : > { %265 = vst.msk [vmem:[%s220_s28] sm:$0xff] %vm263_vm1, %v257_v18 }
 0x142   : > { %v389_v19 = vpop.eup %388 }
 0x143   : > { %v232_v20 = vmul.f32 0.6931472, %v389_v19 }
 0x145   : > { %v235_v21 = vmul.f32 128.0, %v232_v20  ;;  %v248_v22 = vsub.f32 %v247_v17, %v232_v20 }
 0x147   : > { %v236_v23 = vsub.f32 %v234_v16, %v235_v21  ;;  %v259_v25 = vmul.f32 0.7984252, %v248_v22 }
 0x149   : > { %v258_v24 = vmul.f32 0.0015748031, %v236_v23 }
 0x14b   : > { %v260_v26 = vadd.f32 %v259_v25, %v258_v24 }
 0x14d   : > { %v261_v27 = vsub.f32 0.0, %v260_v26 }
 0x14f   : > { %v262_v28 = vmul.f32 %v261_v27, %v257_v18 }
 0x151   : > { %264 = vst.msk [vmem:[%s216_s5] sm:$0xff] %vm263_vm1, %v262_v28 }
 0x152 PF: > { %s15_s15 = sadd.s32 1, %s396_s15  }
 0x153   : > { %p12_p4 = scmp.ge.s32.totalorder %s15_s15, 5  }
 0x155   :  { %14 = sbr.rel (!%p12_p4) target bundleno = 1 (0x1), region = 77 }

</bundles_post_ra>
